<compile_context>
chip_gen: v5e
topology: v5e:2x2
jax: 0.10.0
libtpu: 0.0.40
codegen_flags: <defaults>
</compile_context>

<pallas_src>
import functools

import jax
import jax.numpy as jnp
from jax.experimental import pallas as pl
from jax.experimental.pallas import tpu as pltpu


def _circconv_kernel(x_ref, w_ref, b_ref, out_ref, *, n_adj, batch, n_points):
    # x_ref   : (B, C_in, N)      raw (unpadded) input
    # w_ref   : (C_out, K*C_in)   im2col weight, contraction index = k*C_in + c
    # b_ref   : (C_out, 1)        bias (broadcast over lanes)
    # out_ref : (B, C_out, N)
    ksize = 2 * n_adj + 1

    # Build the im2col slab: for tap k we need x[..., (i + k - n_adj) mod N],
    # which is np.roll(x, n_adj - k) along the point (lane) axis.  All shifts
    # go to the XLU, which is otherwise idle here.
    slabs = []
    for b in range(batch):                     # B is small & static -> unrolled
        xb = x_ref[b]                          # (C_in, N), one (8,128) vreg
        taps = []
        for k in range(ksize):
            shift = (n_adj - k) % n_points
            taps.append(pltpu.roll(xb, shift, 1) if shift else xb)
        slabs.append(jnp.concatenate(taps, axis=0))          # (K*C_in, N)
    rhs = slabs[0] if batch == 1 else jnp.concatenate(slabs, axis=1)  # (K*C_in, B*N)

    # Single MXU matmul over the full contraction depth K*C_in, f32 accumulate.
    acc = jnp.dot(w_ref[...], rhs, preferred_element_type=jnp.float32)
    y = acc + b_ref[...]                       # (C_out, B*N)

    # Write back per batch element; slices are lane-aligned (multiples of N).
    for b in range(batch):
        out_ref[b] = y[:, b * n_points:(b + 1) * n_points].astype(out_ref.dtype)


def circ_conv(x, weight, bias, n_adj):
    """x: (B, C_in, N)  weight: (C_out, C_in, K)  bias: (C_out,) -> (B, C_out, N)"""
    B, C_in, N = x.shape
    C_out, _, K = weight.shape
    assert K == 2 * n_adj + 1

    # One-time weight/bias re-layout (im2col contraction order k*C_in + c).
    w_im2col = jnp.transpose(weight, (0, 2, 1)).reshape(C_out, K * C_in)
    b_col = bias.reshape(C_out, 1)

    kernel = functools.partial(
        _circconv_kernel, n_adj=n_adj, batch=B, n_points=N)

    # Whole problem is a handful of vregs: single invocation, full arrays in
    # VMEM (no grid, no pipelining / per-step overhead).
    return pl.pallas_call(
        kernel,
        out_shape=jax.ShapeDtypeStruct((B, C_out, N), x.dtype),
    )(x, w_im2col, b_col)


def circ_conv_reference(x, weight, bias, n_adj):
    """Pure-JAX reference reproducing the PyTorch forward."""
    if n_adj != 0:
        x = jnp.concatenate([x[..., -n_adj:], x, x[..., :n_adj]], axis=2)
    y = jax.lax.conv_general_dilated(
        x, weight, window_strides=(1,), padding="VALID",
        dimension_numbers=("NCH", "OIH", "NCH"))
    return y + bias.reshape(1, -1, 1)


if __name__ == "__main__":
    # Module config (CircConv(state_dim=8, out_state_dim=8, n_adj=4))
    state_dim = 8
    out_state_dim = 8
    n_adj = 4
    K = 2 * n_adj + 1

    # Small example input: batch=2, channels=state_dim, contour points=128
    B, N = 2, 128

    key = jax.random.PRNGKey(0)
    kx, kw, kb = jax.random.split(key, 3)

    x = jax.random.normal(kx, (B, state_dim, N), dtype=jnp.float32)

    # Deterministic Conv1d-style init: U(-bound, bound), bound = 1/sqrt(C_in*K)
    bound = 1.0 / jnp.sqrt(jnp.float32(state_dim * K))
    weight = jax.random.uniform(kw, (out_state_dim, state_dim, K),
                                minval=-bound, maxval=bound,
                                dtype=jnp.float32)
    bias = jax.random.uniform(kb, (out_state_dim,),
                              minval=-bound, maxval=bound,
                              dtype=jnp.float32)

    out = circ_conv(x, weight, bias, n_adj)
    out = jax.block_until_ready(out)

    ref = circ_conv_reference(x, weight, bias, n_adj)
    assert out.shape == (B, out_state_dim, N)
    assert jnp.allclose(out, ref, atol=1e-5, rtol=1e-5), "mismatch vs reference"

    print("KERNEL_OK")
</pallas_src>

<mosaic_0001>
module attributes {stable_mosaic.version = 11 : i64} {
  func.func @_circconv_kernel(%arg0: memref<2x8x128xf32, #tpu.memory_space<vmem>>, %arg1: memref<8x72xf32, #tpu.memory_space<vmem>>, %arg2: memref<8x1xf32, #tpu.memory_space<vmem>>, %arg3: memref<2x8x128xf32, #tpu.memory_space<vmem>>) attributes {dimension_semantics = [], scalar_prefetch = 0 : i64, scratch_operands = 0 : i64, tpu.core_type = #tpu.core_type<tc>} {
    %c0 = arith.constant 0 : index
    %c0_0 = arith.constant 0 : index
    %c0_1 = arith.constant 0 : index
    %0 = vector.load %arg0[%c0, %c0_0, %c0_1] : memref<2x8x128xf32, #tpu.memory_space<vmem>>, vector<1x8x128xf32>
    %1 = vector.shape_cast %0 : vector<1x8x128xf32> to vector<8x128xf32>
    %c4_i32 = arith.constant 4 : i32
    %2 = tpu.dynamic_rotate %1 by %c4_i32 dim 1 : vector<8x128xf32>, i32 -> vector<8x128xf32>
    %c3_i32 = arith.constant 3 : i32
    %3 = tpu.dynamic_rotate %1 by %c3_i32 dim 1 : vector<8x128xf32>, i32 -> vector<8x128xf32>
    %c2_i32 = arith.constant 2 : i32
    %4 = tpu.dynamic_rotate %1 by %c2_i32 dim 1 : vector<8x128xf32>, i32 -> vector<8x128xf32>
    %c1_i32 = arith.constant 1 : i32
    %5 = tpu.dynamic_rotate %1 by %c1_i32 dim 1 : vector<8x128xf32>, i32 -> vector<8x128xf32>
    %c127_i32 = arith.constant 127 : i32
    %6 = tpu.dynamic_rotate %1 by %c127_i32 dim 1 : vector<8x128xf32>, i32 -> vector<8x128xf32>
    %c126_i32 = arith.constant 126 : i32
    %7 = tpu.dynamic_rotate %1 by %c126_i32 dim 1 : vector<8x128xf32>, i32 -> vector<8x128xf32>
    %c125_i32 = arith.constant 125 : i32
    %8 = tpu.dynamic_rotate %1 by %c125_i32 dim 1 : vector<8x128xf32>, i32 -> vector<8x128xf32>
    %c124_i32 = arith.constant 124 : i32
    %9 = tpu.dynamic_rotate %1 by %c124_i32 dim 1 : vector<8x128xf32>, i32 -> vector<8x128xf32>
    %10 = tpu.concatenate %2, %3, %4, %5, %1, %6, %7, %8, %9 in 0 : vector<8x128xf32>, vector<8x128xf32>, vector<8x128xf32>, vector<8x128xf32>, vector<8x128xf32>, vector<8x128xf32>, vector<8x128xf32>, vector<8x128xf32>, vector<8x128xf32> -> vector<72x128xf32>
    %c1 = arith.constant 1 : index
    %c0_2 = arith.constant 0 : index
    %c0_3 = arith.constant 0 : index
    %11 = vector.load %arg0[%c1, %c0_2, %c0_3] : memref<2x8x128xf32, #tpu.memory_space<vmem>>, vector<1x8x128xf32>
    %12 = vector.shape_cast %11 : vector<1x8x128xf32> to vector<8x128xf32>
    %c4_i32_4 = arith.constant 4 : i32
    %13 = tpu.dynamic_rotate %12 by %c4_i32_4 dim 1 : vector<8x128xf32>, i32 -> vector<8x128xf32>
    %c3_i32_5 = arith.constant 3 : i32
    %14 = tpu.dynamic_rotate %12 by %c3_i32_5 dim 1 : vector<8x128xf32>, i32 -> vector<8x128xf32>
    %c2_i32_6 = arith.constant 2 : i32
    %15 = tpu.dynamic_rotate %12 by %c2_i32_6 dim 1 : vector<8x128xf32>, i32 -> vector<8x128xf32>
    %c1_i32_7 = arith.constant 1 : i32
    %16 = tpu.dynamic_rotate %12 by %c1_i32_7 dim 1 : vector<8x128xf32>, i32 -> vector<8x128xf32>
    %c127_i32_8 = arith.constant 127 : i32
    %17 = tpu.dynamic_rotate %12 by %c127_i32_8 dim 1 : vector<8x128xf32>, i32 -> vector<8x128xf32>
    %c126_i32_9 = arith.constant 126 : i32
    %18 = tpu.dynamic_rotate %12 by %c126_i32_9 dim 1 : vector<8x128xf32>, i32 -> vector<8x128xf32>
    %c125_i32_10 = arith.constant 125 : i32
    %19 = tpu.dynamic_rotate %12 by %c125_i32_10 dim 1 : vector<8x128xf32>, i32 -> vector<8x128xf32>
    %c124_i32_11 = arith.constant 124 : i32
    %20 = tpu.dynamic_rotate %12 by %c124_i32_11 dim 1 : vector<8x128xf32>, i32 -> vector<8x128xf32>
    %21 = tpu.concatenate %13, %14, %15, %16, %12, %17, %18, %19, %20 in 0 : vector<8x128xf32>, vector<8x128xf32>, vector<8x128xf32>, vector<8x128xf32>, vector<8x128xf32>, vector<8x128xf32>, vector<8x128xf32>, vector<8x128xf32>, vector<8x128xf32> -> vector<72x128xf32>
    %22 = tpu.concatenate %10, %21 in 1 : vector<72x128xf32>, vector<72x128xf32> -> vector<72x256xf32>
    %c0_12 = arith.constant 0 : index
    %c0_13 = arith.constant 0 : index
    %23 = vector.load %arg1[%c0_12, %c0_13] : memref<8x72xf32, #tpu.memory_space<vmem>>, vector<8x72xf32>
    %cst = arith.constant dense<0.000000e+00> : vector<8x256xf32>
    %24 = tpu.matmul %23, %22, %cst {dimension_numbers = #tpu.dot_dimension_numbers<[1], [0], [0], [1], [0, 0, 1, 1], [], []>} : vector<8x72xf32>, vector<72x256xf32>, vector<8x256xf32> -> vector<8x256xf32>
    %c0_14 = arith.constant 0 : index
    %c0_15 = arith.constant 0 : index
    %25 = vector.load %arg2[%c0_14, %c0_15] : memref<8x1xf32, #tpu.memory_space<vmem>>, vector<8x1xf32>
    %26 = vector.broadcast %25 : vector<8x1xf32> to vector<8x256xf32>
    %27 = arith.addf %24, %26 : vector<8x256xf32>
    %28 = vector.extract_strided_slice %27 {offsets = [0, 0], sizes = [8, 128], strides = [1, 1]} : vector<8x256xf32> to vector<8x128xf32>
    %c0_16 = arith.constant 0 : index
    %c0_17 = arith.constant 0 : index
    %c0_18 = arith.constant 0 : index
    %29 = vector.load %arg3[%c0_16, %c0_17, %c0_18] : memref<2x8x128xf32, #tpu.memory_space<vmem>>, vector<1x8x128xf32>
    %30 = vector.shape_cast %29 : vector<1x8x128xf32> to vector<8x128xf32>
    %31 = vector.shape_cast %28 : vector<8x128xf32> to vector<1x8x128xf32>
    tpu.vector_store %arg3[%c0_16, %c0_17, %c0_18], %31 {strides = array<i32>} : memref<2x8x128xf32, #tpu.memory_space<vmem>>, vector<1x8x128xf32>,
    %32 = vector.extract_strided_slice %27 {offsets = [0, 128], sizes = [8, 128], strides = [1, 1]} : vector<8x256xf32> to vector<8x128xf32>
    %c1_19 = arith.constant 1 : index
    %c0_20 = arith.constant 0 : index
    %c0_21 = arith.constant 0 : index
    %33 = vector.load %arg3[%c1_19, %c0_20, %c0_21] : memref<2x8x128xf32, #tpu.memory_space<vmem>>, vector<1x8x128xf32>
    %34 = vector.shape_cast %33 : vector<1x8x128xf32> to vector<8x128xf32>
    %35 = vector.shape_cast %32 : vector<8x128xf32> to vector<1x8x128xf32>
    tpu.vector_store %arg3[%c1_19, %c0_20, %c0_21], %35 {strides = array<i32>} : memref<2x8x128xf32, #tpu.memory_space<vmem>>, vector<1x8x128xf32>,
    return
  }
}

</mosaic_0001>

<bundles_post_ra>
// kernel: tpu_custom_call.1
= control target key start
LH: loop header
LB: loop body
LE: loop exit
PB: predicated region body
PF: predicated region fallthrough
CT: control target
= control target key end

     0   :  { %8 = vsyncpa [#allocation3], 0  ;;  %s299_s0 = inlined_call_operand.hbm [shape: f32[2,8,128], index: 0, kind: input, shape index: {}]   ;;  %s300_s1 = inlined_call_operand.vmem [shape: f32[8,72], index: 1, kind: input, shape index: {}]   ;;  %s301_s2 = inlined_call_operand.vmem [shape: f32[8,1], index: 2, kind: input, shape index: {}]   ;;  %s302_s3 = inlined_call_operand.hbm [shape: f32[2,8,128], index: 3, kind: output, shape index: {}]  }
   0x1   :  { %9 = vsyncpa [#allocation4], 0  ;;  %s14_s14 = sshll.u32 %s299_s0, 4  ;;  %s248_s15 = smov [#allocation2]   ;;  %s15_s14 = int_to_ptr.hbm [resolvable:$true] %s14_s14 }
   0x2   :  { %s16_s16 = sshll.u32 %s248_s15, 4  ;;  %s249_s17 = smov 128   ;;  %s17_s16 = int_to_ptr.vmem [resolvable:$true] %s16_s16 }
   0x3   :  { %s250_s18 = smov 8  }
   0x4   :  { %22 = dma.hbm_to_vmem [thread:$0]  %s15_s14, 256, %s17_s16, [#allocation3], %s249_s17, %s249_s17, %s250_s18  }
   0x5   :  { %244 = dma.done.wait [#allocation3], 256  }
   0x6   :  { %245 = vsyncadd [#allocation3], 4294967040  ;;  %v31_v0 = vld [vmem:[#allocation2] sm:$0xff]  ;;  %v49_v1 = vld [vmem:[#allocation2 + $0x8] sm:$0xff]  ;;  %s251_s19 = smov 124   ;;  %s252_s20 = smov 126  }
   0x7   :  { %v154_v2 = vpack.i.bf16 %v49_v1, %v31_v0  ;;  %s253_s0 = smov 1   ;;  %s254_s21 = smov 125   ;;  %v67_v3 = vld [vmem:[%s301_s2] sm:$0xff]  ;;  %v259_v4 = vmov 0   ;;  %vm73_vm0 = vcmask 588800  }
   0x8   :  { %s255_s22 = smov 127   ;;  %s256_s23 = smov 2   ;;  %194 = vset.pattern.permute.xlu2 %v259_v4  ;;  %195 = vset.pattern.permute.xlu0 %v259_v4  ;;  %v66_v29 = vld [vmem:[%s300_s1] sm:$0xff] }
   0x9   :  { %155 = vrot.lane.b32.xlu0 %v154_v2, %s251_s19  ;;  %165 = vrot.lane.b32.xlu1 %v154_v2, %s252_s20  ;;  %s257_s24 = smov 3   ;;  %s258_s25 = smov 4  }
   0xa   :  { %175 = vrot.lane.b32.xlu2 %v154_v2, %s253_s0  ;;  %s260_s29 = smov [#allocation5]   ;;  %s126_s6 = sshll.u32 %s302_s3, 4  ;;  %s127_s6 = int_to_ptr.hbm [resolvable:$true] %s126_s6 }
   0xb   :  { %s124_s30 = sshll.u32 %s260_s29, 4  ;;  %s125_s30 = int_to_ptr.vmem [resolvable:$true] %s124_s30 }
  0x11   :  { %160 = vrot.lane.b32.xlu0 %v154_v2, %s254_s21  ;;  %170 = vrot.lane.b32.xlu1 %v154_v2, %s255_s22 }
  0x12   :  { %180 = vrot.lane.b32.xlu2 %v154_v2, %s256_s23 }
  0x19   :  { %185 = vrot.lane.b32.xlu0 %v154_v2, %s257_s24  ;;  %190 = vrot.lane.b32.xlu1 %v154_v2, %s258_s25 }
  0x1a   :  { %70 = vperm.xlu2 %194, %v67_v3  }
  0x64   :  { %v176_v9 = vpop.permute.xlu2 %175 }
  0x65   :  { %v177_v20 = vunpack.i.l.bf16 %v176_v9  ;;  %v178_v21 = vunpack.i.h.bf16 %v176_v9 }
  0x6c   :  { %v181_v18 = vpop.permute.xlu2 %180 }
  0x6d   :  { %v182_v22 = vunpack.i.l.bf16 %v181_v18  ;;  %v183_v23 = vunpack.i.h.bf16 %v181_v18 }
  0x74   :  { %v71_v30 = vpop.permute.xlu2 %70 }
  0x7b   :  { %v156_v5 = vpop.permute.xlu0 %155  ;;  %v166_v6 = vpop.permute.xlu1 %165 }
  0x7c   :  { %v157_v7 = vunpack.i.l.bf16 %v156_v5  ;;  %v158_v8 = vunpack.i.h.bf16 %v156_v5  ;;  %v167_v14 = vunpack.i.l.bf16 %v166_v6  ;;  %v168_v15 = vunpack.i.h.bf16 %v166_v6 }
  0x7e   :  { %84 = vmatpush.msra.mxu0 %v157_v7  ;;  %104 = vmatpush.msra.mxu1 %v158_v8 }
  0x83   :  { %v161_v10 = vpop.permute.xlu0 %160  ;;  %v171_v11 = vpop.permute.xlu1 %170 }
  0x84   :  { %v162_v12 = vunpack.i.l.bf16 %v161_v10  ;;  %v163_v13 = vunpack.i.h.bf16 %v161_v10  ;;  %v172_v16 = vunpack.i.l.bf16 %v171_v11  ;;  %v173_v17 = vunpack.i.h.bf16 %v171_v11 }
  0x86   :  { %85 = vmatpush.msra.mxu0 %v162_v12  ;;  %105 = vmatpush.msra.mxu1 %v163_v13 }
  0x88   :  { %86 = vmatpush.msra.mxu0 %v167_v14  ;;  %106 = vmatpush.msra.mxu1 %v168_v15 }
  0x8a   :  { %87 = vmatpush.msra.mxu0 %v172_v16  ;;  %107 = vmatpush.msra.mxu1 %v173_v17 }
  0x8b   :  { %v186_v19 = vpop.permute.xlu0 %185  ;;  %v191_v24 = vpop.permute.xlu1 %190 }
  0x8c   :  { %88 = vmatpush.msra.mxu0 %v31_v0  ;;  %108 = vmatpush.msra.mxu1 %v49_v1  ;;  %v188_v25 = vunpack.i.h.bf16 %v186_v19  ;;  %v187_v26 = vunpack.i.l.bf16 %v186_v19  ;;  %v193_v27 = vunpack.i.h.bf16 %v191_v24  ;;  %v192_v28 = vunpack.i.l.bf16 %v191_v24 }
  0x8e   :  { %89 = vmatpush.msra.mxu0 %v177_v20  ;;  %109 = vmatpush.msra.mxu1 %v178_v21 }
  0x90   :  { %90 = vmatpush.msra.mxu0 %v182_v22  ;;  %110 = vmatpush.msra.mxu1 %v183_v23 }
  0x92   :  { %91 = vmatpush.msra.mxu0 %v187_v26  ;;  %111 = vmatpush.msra.mxu1 %v188_v25 }
  0x94   :  { %92 = vmatpush.msra.mxu0 %v192_v28  ;;  %112 = vmatpush.msra.mxu1 %v193_v27 }
  0x95   :  { %139 = vmatmul.msk.f32.vlgmr.msra.gmra.mxu0 %vm73_vm0, %v66_v29  ;;  %140 = vmatmul.msk.f32.vlgmr.msra.gmra.mxu1 %vm73_vm0, %v66_v29 }
 0x112   :  { %v94_v31 = vpop.f32.mrf.mxu0  ;;  %v114_v32 = vpop.f32.mrf.mxu1 }
 0x113   :  { %v95_v33 = vadd.f32 %v94_v31, %v71_v30  ;;  %v115_v34 = vadd.f32 %v114_v32, %v71_v30 }
 0x115   :  { %117 = vst [vmem:[#allocation5] sm:$0xff] %v95_v33 }
 0x116   :  { %119 = vst [vmem:[#allocation5 + $0x8] sm:$0xff] %v115_v34 }
 0x117   :  { %132 = dma.vmem_to_hbm [thread:$0]  %s125_s30, 256, %s127_s6, [#allocation4], %s249_s17, %s249_s17, %s250_s18  }
 0x118   :  { %246 = dma.done.wait [#allocation4], 256  }
 0x119   :  { %247 = vsyncadd [#allocation4], 4294967040 }
 0x11a   :  { %137 = vsyncpa [#allocation3], 1 }
 0x11b   :  { %138 = vsyncpa [#allocation4], 1 }

</bundles_post_ra>
